<compile_context>
chip_gen: v7x
topology: tpu7x:2x2x1
jax: 0.10.0
libtpu: 0.0.40
codegen_flags: <defaults>
</compile_context>

<pallas_src>
import jax
import jax.numpy as jnp
from jax.experimental import pallas as pl
from jax.experimental.pallas import tpu as pltpu


_LANE = 128


def _round_up(v, m):
    return ((v + m - 1) // m) * m


def _mlp_kernel(x_ref, *rest):
    """rest = (w1, b1, w2, b2, ..., w_out, b_out, out_ref)."""
    out_ref = rest[-1]
    params = rest[:-1]
    n_layers = len(params) // 2

    # In-kernel f32 -> bf16 cast for the MXU; avoids a separate XLA convert
    # pass over the whole input array in HBM (the dominant traffic).
    h = x_ref[...].astype(jnp.bfloat16)  # (TB, 784) bf16

    # Static Python loop (3 layers) -> fully unrolled for the LLO scheduler.
    for i in range(n_layers):
        w = params[2 * i][...]            # bf16 (in_pad, out_pad)
        b = params[2 * i + 1][...]        # f32  (1, out_pad)
        acc = jnp.dot(h, w, preferred_element_type=jnp.float32) + b
        if i < n_layers - 1:
            acc = jnp.maximum(acc, 0.0)   # ReLU in f32 on the VPU
            h = acc.astype(jnp.bfloat16)  # back to bf16 for the next MXU op
        else:
            h = acc                       # final logits stay f32

    # Numerically stable log_softmax over the class dim (last dim), all f32.
    # Padded tail rows of the last block go through exp() but their results
    # are discarded by the masked writeback (no cross-row reduction here).
    m = jnp.max(h, axis=-1, keepdims=True)
    s = h - m
    lse = jnp.log(jnp.sum(jnp.exp(s), axis=-1, keepdims=True))
    out_ref[...] = (s - lse).astype(out_ref.dtype)


def _pad_params(params, lane=_LANE):
    """Zero-pad hidden widths to a multiple of 128 lanes; keep class dim as-is."""
    n_layers = len(params)
    padded = []
    prev_out_pad = params[0][0].shape[0]  # input feature dim (784), unpadded
    for i, (w, b) in enumerate(params):
        in_dim, out_dim = w.shape
        in_pad = prev_out_pad
        out_pad = _round_up(out_dim, lane) if i < n_layers - 1 else out_dim
        w_p = jnp.zeros((in_pad, out_pad), jnp.float32).at[:in_dim, :out_dim].set(w)
        b_p = jnp.zeros((1, out_pad), jnp.float32).at[0, :out_dim].set(b)
        padded.append((w_p, b_p))
        prev_out_pad = out_pad
    return padded


def _choose_tb(n, tb_max):
    """Batch tile: big enough to amortize per-step overhead, >=2 grid steps
    for mid/large batches (v7x megacore), bounded by VMEM (f32 x block at
    TB=4096 is ~12.9 MB, x2 buffers ~25.7 MB)."""
    if n <= _LANE:
        return n  # single full-extent block; megacore split irrelevant here
    tb = min(tb_max, _round_up(pl.cdiv(n, 2), 16))
    return min(tb, n)


def custom_mlp_forward(x, params, *, tb_max=4096):
    """x: (..., 784)-reshapeable f32 array. params: list of (W, b), W (in, out).

    Returns (None, log_probs) with log_probs shaped (output_size, batch),
    matching the PyTorch forward (log_softmax over dim=0 of output.T).
    """
    # TODO(synk): the PyTorch forward prints get_digit_string_repr(x[0]); this
    # is a debug print with no kernel equivalent and is skipped.
    x2d = x.reshape(-1, 784)  # stays f32; bf16 cast happens in-kernel
    n = x2d.shape[0]
    out_size = params[-1][0].shape[1]

    TB = _choose_tb(n, tb_max)
    grid = (pl.cdiv(n, TB),)

    padded = _pad_params(params)

    flat_args = [x2d]
    in_specs = [pl.BlockSpec((TB, 784), lambda i: (i, 0))]
    for (w_p, b_p) in padded:
        flat_args += [w_p.astype(jnp.bfloat16), b_p]  # weights bf16, bias f32
        in_specs += [
            pl.BlockSpec(w_p.shape, lambda i: (0, 0)),  # resident across grid
            pl.BlockSpec(b_p.shape, lambda i: (0, 0)),
        ]

    out = pl.pallas_call(
        _mlp_kernel,
        out_shape=jax.ShapeDtypeStruct((n, out_size), jnp.float32),
        grid=grid,
        in_specs=in_specs,
        out_specs=pl.BlockSpec((TB, out_size), lambda i: (i, 0)),
        compiler_params=pltpu.CompilerParams(
            dimension_semantics=("parallel",),
            vmem_limit_bytes=48 * 1024 * 1024,
        ),
    )(*flat_args)

    # Match PyTorch: output_layer(x).T, log_softmax over dim=0 (classes).
    # TODO(synk): a lane-dense (out_size, n) kernel output would remove this
    # XLA transpose; output bytes are ~2% of x traffic, so skipped (low prio).
    return (None, out.T)  # (output_size, batch)


def init_params(key, input_size, hidden_sizes_str, output_size):
    hidden_sizes = [int(s) for s in hidden_sizes_str.split(",")]
    sizes = [input_size] + hidden_sizes + [output_size]
    params = []
    for i in range(len(sizes) - 1):
        key, kw, kb = jax.random.split(key, 3)
        fan_in = sizes[i]
        bound = 1.0 / (fan_in ** 0.5)
        w = jax.random.uniform(kw, (sizes[i], sizes[i + 1]),
                               minval=-bound, maxval=bound, dtype=jnp.float32)
        b = jax.random.uniform(kb, (sizes[i + 1],),
                               minval=-bound, maxval=bound, dtype=jnp.float32)
        params.append((w, b))
    return params


if __name__ == "__main__":
    key = jax.random.PRNGKey(0)
    kx, kp = jax.random.split(key)

    input_size = 784
    hidden_sizes = "32,32"
    output_size = 10
    batch = 8

    # MNIST-like input; the forward does x.view(-1, 784).
    x = jax.random.normal(kx, (batch, 1, 28, 28), dtype=jnp.float32)
    params = init_params(kp, input_size, hidden_sizes, output_size)

    _, log_probs = custom_mlp_forward(x, params)
    log_probs = jax.block_until_ready(log_probs)

    # Sanity checks: shape (output_size, batch), columns sum to 1 in prob space.
    assert log_probs.shape == (output_size, batch)
    col_sums = jnp.exp(log_probs).sum(axis=0)
    assert bool(jnp.allclose(col_sums, 1.0, atol=1e-4))

    # Cross-check against a plain JAX reference using the same bf16 matmul
    # inputs / f32 accumulation as the kernel.
    h = x.reshape(-1, 784)
    for i, (w, b) in enumerate(params):
        h = jnp.dot(h.astype(jnp.bfloat16), w.astype(jnp.bfloat16),
                    preferred_element_type=jnp.float32) + b
        if i < len(params) - 1:
            h = jnp.maximum(h, 0.0)
    ref = jax.nn.log_softmax(h.T, axis=0)
    assert bool(jnp.allclose(ref, log_probs, atol=2e-3, rtol=2e-3))

    print("KERNEL_OK")
</pallas_src>

<mosaic_0001>
module attributes {stable_mosaic.version = 11 : i64} {
  func.func @_mlp_kernel(%arg0: i32, %arg1: memref<8x784xf32, #tpu.memory_space<vmem>>, %arg2: memref<784x128xbf16, #tpu.memory_space<vmem>>, %arg3: memref<1x128xf32, #tpu.memory_space<vmem>>, %arg4: memref<128x128xbf16, #tpu.memory_space<vmem>>, %arg5: memref<1x128xf32, #tpu.memory_space<vmem>>, %arg6: memref<128x10xbf16, #tpu.memory_space<vmem>>, %arg7: memref<1x10xf32, #tpu.memory_space<vmem>>, %arg8: memref<8x10xf32, #tpu.memory_space<vmem>>) attributes {dimension_semantics = [#tpu.dimension_semantics<parallel>], iteration_bounds = array<i64: 1>, scalar_prefetch = 0 : i64, scratch_operands = 0 : i64, tpu.core_type = #tpu.core_type<tc>, window_params = [{transform_indices = @transform_0, window_bounds = array<i64: 8, 784>}, {pipeline_mode = #tpu.pipeline_mode<synchronous>, transform_indices = @transform_1, window_bounds = array<i64: 784, 128>}, {pipeline_mode = #tpu.pipeline_mode<synchronous>, transform_indices = @transform_2, window_bounds = array<i64: 1, 128>}, {pipeline_mode = #tpu.pipeline_mode<synchronous>, transform_indices = @transform_3, window_bounds = array<i64: 128, 128>}, {pipeline_mode = #tpu.pipeline_mode<synchronous>, transform_indices = @transform_4, window_bounds = array<i64: 1, 128>}, {pipeline_mode = #tpu.pipeline_mode<synchronous>, transform_indices = @transform_5, window_bounds = array<i64: 128, 10>}, {pipeline_mode = #tpu.pipeline_mode<synchronous>, transform_indices = @transform_6, window_bounds = array<i64: 1, 10>}, {transform_indices = @transform_7, window_bounds = array<i64: 8, 10>}]} {
    %c0 = arith.constant 0 : index
    %c0_0 = arith.constant 0 : index
    %0 = vector.load %arg1[%c0, %c0_0] : memref<8x784xf32, #tpu.memory_space<vmem>>, vector<8x784xf32>
    %1 = arith.truncf %0 : vector<8x784xf32> to vector<8x784xbf16>
    %c0_1 = arith.constant 0 : index
    %c0_2 = arith.constant 0 : index
    %2 = vector.load %arg2[%c0_1, %c0_2] : memref<784x128xbf16, #tpu.memory_space<vmem>>, vector<784x128xbf16>
    %c0_3 = arith.constant 0 : index
    %c0_4 = arith.constant 0 : index
    %3 = vector.load %arg3[%c0_3, %c0_4] : memref<1x128xf32, #tpu.memory_space<vmem>>, vector<1x128xf32>
    %cst = arith.constant dense<0.000000e+00> : vector<8x128xf32>
    %4 = tpu.matmul %1, %2, %cst {dimension_numbers = #tpu.dot_dimension_numbers<[1], [0], [0], [1], [0, 0, 1, 1], [], []>} : vector<8x784xbf16>, vector<784x128xbf16>, vector<8x128xf32> -> vector<8x128xf32>
    %5 = vector.broadcast %3 : vector<1x128xf32> to vector<8x128xf32>
    %6 = arith.addf %4, %5 : vector<8x128xf32>
    %cst_5 = arith.constant 0.000000e+00 : f32
    %7 = vector.broadcast %cst_5 : f32 to vector<8x128xf32>
    %8 = arith.maximumf %6, %7 : vector<8x128xf32>
    %9 = arith.truncf %8 : vector<8x128xf32> to vector<8x128xbf16>
    %c0_6 = arith.constant 0 : index
    %c0_7 = arith.constant 0 : index
    %10 = vector.load %arg4[%c0_6, %c0_7] : memref<128x128xbf16, #tpu.memory_space<vmem>>, vector<128x128xbf16>
    %c0_8 = arith.constant 0 : index
    %c0_9 = arith.constant 0 : index
    %11 = vector.load %arg5[%c0_8, %c0_9] : memref<1x128xf32, #tpu.memory_space<vmem>>, vector<1x128xf32>
    %cst_10 = arith.constant dense<0.000000e+00> : vector<8x128xf32>
    %12 = tpu.matmul %9, %10, %cst_10 {dimension_numbers = #tpu.dot_dimension_numbers<[1], [0], [0], [1], [0, 0, 1, 1], [], []>} : vector<8x128xbf16>, vector<128x128xbf16>, vector<8x128xf32> -> vector<8x128xf32>
    %13 = vector.broadcast %11 : vector<1x128xf32> to vector<8x128xf32>
    %14 = arith.addf %12, %13 : vector<8x128xf32>
    %cst_11 = arith.constant 0.000000e+00 : f32
    %15 = vector.broadcast %cst_11 : f32 to vector<8x128xf32>
    %16 = arith.maximumf %14, %15 : vector<8x128xf32>
    %17 = arith.truncf %16 : vector<8x128xf32> to vector<8x128xbf16>
    %c0_12 = arith.constant 0 : index
    %c0_13 = arith.constant 0 : index
    %18 = vector.load %arg6[%c0_12, %c0_13] : memref<128x10xbf16, #tpu.memory_space<vmem>>, vector<128x10xbf16>
    %c0_14 = arith.constant 0 : index
    %c0_15 = arith.constant 0 : index
    %19 = vector.load %arg7[%c0_14, %c0_15] : memref<1x10xf32, #tpu.memory_space<vmem>>, vector<1x10xf32>
    %cst_16 = arith.constant dense<0.000000e+00> : vector<8x10xf32>
    %20 = tpu.matmul %17, %18, %cst_16 {dimension_numbers = #tpu.dot_dimension_numbers<[1], [0], [0], [1], [0, 0, 1, 1], [], []>} : vector<8x128xbf16>, vector<128x10xbf16>, vector<8x10xf32> -> vector<8x10xf32>
    %21 = vector.broadcast %19 : vector<1x10xf32> to vector<8x10xf32>
    %22 = arith.addf %20, %21 : vector<8x10xf32>
    %cst_17 = arith.constant dense<0xFF800000> : vector<8xf32>
    %23 = vector.multi_reduction <maximumf>, %22, %cst_17 [1] : vector<8x10xf32> to vector<8xf32>
    %24 = vector.shape_cast %23 : vector<8xf32> to vector<8x1xf32>
    %25 = vector.broadcast %24 : vector<8x1xf32> to vector<8x10xf32>
    %26 = arith.subf %22, %25 : vector<8x10xf32>
    %27 = math.exp %26 : vector<8x10xf32>
    %cst_18 = arith.constant dense<0.000000e+00> : vector<8xf32>
    %28 = vector.multi_reduction <add>, %27, %cst_18 [1] : vector<8x10xf32> to vector<8xf32>
    %29 = vector.shape_cast %28 : vector<8xf32> to vector<8x1xf32>
    %30 = math.log %29 : vector<8x1xf32>
    %31 = vector.broadcast %30 : vector<8x1xf32> to vector<8x10xf32>
    %32 = arith.subf %26, %31 : vector<8x10xf32>
    %c0_19 = arith.constant 0 : index
    %c0_20 = arith.constant 0 : index
    %33 = vector.load %arg8[%c0_19, %c0_20] : memref<8x10xf32, #tpu.memory_space<vmem>>, vector<8x10xf32>
    tpu.vector_store %arg8[%c0_19, %c0_20], %32 {strides = array<i32>} : memref<8x10xf32, #tpu.memory_space<vmem>>, vector<8x10xf32>,
    return
  }
  func.func @transform_0(%arg0: i32) -> (i32, i32) {
    %c0_i32 = arith.constant 0 : i32
    %c0_i32_0 = arith.constant 0 : i32
    return %arg0, %c0_i32 : i32, i32
  }
  func.func @transform_1(%arg0: i32) -> (i32, i32) {
    %c0_i32 = arith.constant 0 : i32
    %c0_i32_0 = arith.constant 0 : i32
    %c0_i32_1 = arith.constant 0 : i32
    return %c0_i32, %c0_i32_0 : i32, i32
  }
  func.func @transform_2(%arg0: i32) -> (i32, i32) {
    %c0_i32 = arith.constant 0 : i32
    %c0_i32_0 = arith.constant 0 : i32
    %c0_i32_1 = arith.constant 0 : i32
    return %c0_i32, %c0_i32_0 : i32, i32
  }
  func.func @transform_3(%arg0: i32) -> (i32, i32) {
    %c0_i32 = arith.constant 0 : i32
    %c0_i32_0 = arith.constant 0 : i32
    %c0_i32_1 = arith.constant 0 : i32
    return %c0_i32, %c0_i32_0 : i32, i32
  }
  func.func @transform_4(%arg0: i32) -> (i32, i32) {
    %c0_i32 = arith.constant 0 : i32
    %c0_i32_0 = arith.constant 0 : i32
    %c0_i32_1 = arith.constant 0 : i32
    return %c0_i32, %c0_i32_0 : i32, i32
  }
  func.func @transform_5(%arg0: i32) -> (i32, i32) {
    %c0_i32 = arith.constant 0 : i32
    %c0_i32_0 = arith.constant 0 : i32
    %c0_i32_1 = arith.constant 0 : i32
    return %c0_i32, %c0_i32_0 : i32, i32
  }
  func.func @transform_6(%arg0: i32) -> (i32, i32) {
    %c0_i32 = arith.constant 0 : i32
    %c0_i32_0 = arith.constant 0 : i32
    %c0_i32_1 = arith.constant 0 : i32
    return %c0_i32, %c0_i32_0 : i32, i32
  }
  func.func @transform_7(%arg0: i32) -> (i32, i32) {
    %c0_i32 = arith.constant 0 : i32
    %c0_i32_0 = arith.constant 0 : i32
    return %arg0, %c0_i32 : i32, i32
  }
}

</mosaic_0001>

<bundles_post_ra>
// kernel: tpu_custom_call.1
= control target key start
LH: loop header
LB: loop body
LE: loop exit
PB: predicated region body
PF: predicated region fallthrough
CT: control target
= control target key end

     0   :  { %12 = vsyncpa [#allocation3], 0  ;;  %s1409_s0 = inlined_call_operand.hbm [shape: f32[8,784], index: 0, kind: input, shape index: {}]   ;;  %s1410_s1 = inlined_call_operand.hbm [shape: bf16[784,128], index: 1, kind: input, shape index: {}]   ;;  %s1411_s2 = inlined_call_operand.vmem [shape: f32[1,128], index: 2, kind: input, shape index: {}]   ;;  %s1412_s3 = inlined_call_operand.vmem [shape: bf16[128,128], index: 3, kind: input, shape index: {}]   ;;  %s1413_s4 = inlined_call_operand.vmem [shape: f32[1,128], index: 4, kind: input, shape index: {}]   ;;  %s1414_s5 = inlined_call_operand.vmem [shape: bf16[128,10], index: 5, kind: input, shape index: {}]   ;;  %s1415_s6 = inlined_call_operand.vmem [shape: f32[1,10], index: 6, kind: input, shape index: {}]   ;;  %s1416_s7 = inlined_call_operand.hbm [shape: f32[8,10], index: 7, kind: output, shape index: {}]  }
   0x1   :  { %13 = vsyncpa [#allocation6], 0 }
   0x2   :  { %14 = vsyncpa [#allocation4], 0  ;;  %s1236_s24 = smov [#allocation2]   ;;  %s1237_s26 = smov [#allocation5]  }
   0x3   :  { %s21_s25 = sshll.u32 %s1236_s24, 4  ;;  %s30_s27 = sshll.u32 %s1237_s26, 4  ;;  %s22_s25 = int_to_ptr.vmem [resolvable:$true] %s21_s25  ;;  %s1283_s27 = int_to_ptr.vmem [resolvable:$true] %s30_s27 }
   0x4   :  { %s1164_s30 = scalar_lea.hbm %s1409_s0, 896 }
   0x5   :  { %p1165_p0 = scmp.ne.s32.totalorder %s1409_s0, %s1164_s30  ;;  %p1168_p1 = scmp.lt.u32.totalorder %s1164_s30, %s1409_s0 }
   0x7   :  { %p1170_p2 = pnand %p1168_p1, %p1165_p0 }
   0x9   :  { %1173 = shalt.err (!%p1170_p2)
}
   0xa   :  { %s1174_s12 = scalar_lea.vmem %s22_s25, 896  ;;  %p1179_p4 = scmp.lt.s32.totalorder %s22_s25, %s22_s25 }
   0xb   :  { %p1175_p3 = scmp.ne.s32.totalorder %s22_s25, %s1174_s12  ;;  %p1180_p5 = scmp.lt.s32.totalorder %s1174_s12, %s1174_s12 }
   0xd   :  { %p1181_p6 = por %p1180_p5, %p1179_p4 }
   0xf   :  { %p1182_p7 = pnand %p1181_p6, %p1175_p3 }
  0x11   :  { %1185 = shalt.err (!%p1182_p7)
}
  0x12   :  { %24 = dma.hbm_to_vmem [thread:$0]  %s1409_s0, 896, %s22_s25, [#allocation3]  }
  0x13   :  { %s1186_s17 = scalar_lea.hbm %s1410_s1, 6272 }
  0x14   :  { %p1187_p8 = scmp.ne.s32.totalorder %s1410_s1, %s1186_s17  ;;  %p1190_p9 = scmp.lt.u32.totalorder %s1186_s17, %s1410_s1 }
  0x16   :  { %p1192_p10 = pnand %p1190_p9, %p1187_p8 }
  0x18   :  { %1195 = shalt.err (!%p1192_p10)
}
  0x19   :  { %s1196_s22 = scalar_lea.vmem %s1283_s27, 6272  ;;  %p1201_p12 = scmp.lt.s32.totalorder %s1283_s27, %s1283_s27 }
  0x1a   :  { %p1197_p11 = scmp.ne.s32.totalorder %s1283_s27, %s1196_s22  ;;  %p1202_p13 = scmp.lt.s32.totalorder %s1196_s22, %s1196_s22 }
  0x1c   :  { %p1203_p0 = por %p1202_p13, %p1201_p12 }
  0x1e   :  { %p1204_p1 = pnand %p1203_p0, %p1197_p11 }
  0x20   :  { %1207 = shalt.err (!%p1204_p1)
}
  0x21   :  { %s1238_s0 = smov 64   ;;  %s1239_s23 = smov 4  }
  0x22   :  { %36 = dma.hbm_to_vmem [thread:$0]  %s1410_s1, 6272, %s1283_s27, [#allocation6], %s1238_s0, %s1238_s0, %s1239_s23  }
  0x23   :  { %1230 = dma.done.wait [#allocation3], 896  }
  0x24   :  { %1231 = vsyncadd [#allocation3], 4294966400 }
  0x25   :  { %1232 = dma.done.wait [#allocation6], 6272  }
  0x26   :  { %1233 = vsyncadd [#allocation6], 4294961024  ;;  %v1095_v0 = vld [vmem:[#allocation5 + $0x40] sm:$0xff]   ;;  %v1099_v4 = vld [vmem:[#allocation5 + $0x48] sm:$0xff]   ;;  %v1240_v44 = vmov 0.0   ;;  %vm1241_vm0 = vmmov 0  }
  0x27   :  { %v1096_v1 = vld [vmem:[#allocation5] sm:$0xff]   ;;  %956 = vmatprep.subr.bf16.mxu0 %v1095_v0  ;;  %v1100_v5 = vld [vmem:[#allocation5 + $0x8] sm:$0xff]   ;;  %v1103_v8 = vld [vmem:[#allocation5 + $0x50] sm:$0xff]   ;;  %vm467_vm1 = vcmask 130048   ;;  %vm857_vm2 = vcmask 80896  }
  0x28   :  { %v1097_v2 = vld [vmem:[#allocation5 + $0xc0] sm:$0xff]   ;;  %957 = vmatpush3.bf16.msra.mxu0 %v1096_v1  ;;  %v1101_v6 = vld [vmem:[#allocation5 + $0xc8] sm:$0xff]   ;;  %v1104_v9 = vld [vmem:[#allocation5 + $0x10] sm:$0xff]  }
  0x29   :  { %v1098_v3 = vld [vmem:[#allocation5 + $0x80] sm:$0xff]   ;;  %978 = vmatprep.subr.bf16.mxu1 %v1097_v2  ;;  %958 = vmatprep.subr.bf16.mxu0 %v1099_v4  ;;  %v1102_v7 = vld [vmem:[#allocation5 + $0x88] sm:$0xff]   ;;  %v1105_v10 = vld [vmem:[#allocation5 + $0xd0] sm:$0xff]  }
  0x2a   :  { %979 = vmatpush3.bf16.msra.mxu1 %v1098_v3  ;;  %v1106_v11 = vld [vmem:[#allocation5 + $0x90] sm:$0xff]   ;;  %v1107_v12 = vld [vmem:[#allocation5 + $0x58] sm:$0xff]   ;;  %v1111_v16 = vld [vmem:[#allocation5 + $0x60] sm:$0xff]  }
  0x2b   :  { %980 = vmatprep.subr.bf16.mxu1 %v1101_v6  ;;  %v1108_v13 = vld [vmem:[#allocation5 + $0x18] sm:$0xff]   ;;  %v1112_v17 = vld [vmem:[#allocation5 + $0x20] sm:$0xff]   ;;  %v1115_v20 = vld [vmem:[#allocation5 + $0x68] sm:$0xff]  }
  0x2c   :  { %959 = vmatpush3.bf16.msra.mxu0 %v1100_v5  ;;  %v1109_v14 = vld [vmem:[#allocation5 + $0xd8] sm:$0xff]   ;;  %v1113_v18 = vld [vmem:[#allocation5 + $0xe0] sm:$0xff]   ;;  %v1116_v21 = vld [vmem:[#allocation5 + $0x28] sm:$0xff]  }
  0x2d   :  { %960 = vmatprep.subr.bf16.mxu0 %v1103_v8  ;;  %v1110_v15 = vld [vmem:[#allocation5 + $0x98] sm:$0xff]   ;;  %v1114_v19 = vld [vmem:[#allocation5 + $0xa0] sm:$0xff]   ;;  %v1117_v22 = vld [vmem:[#allocation5 + $0xe8] sm:$0xff]  }
  0x2e   :  { %981 = vmatpush3.bf16.msra.mxu1 %v1102_v7  ;;  %v1118_v23 = vld [vmem:[#allocation5 + $0xa8] sm:$0xff]   ;;  %v1119_v24 = vld [vmem:[#allocation5 + $0x70] sm:$0xff]   ;;  %v1123_v28 = vld [vmem:[#allocation5 + $0x78] sm:$0xff]  }
  0x2f   :  { %982 = vmatprep.subr.bf16.mxu1 %v1105_v10  ;;  %v1120_v25 = vld [vmem:[#allocation5 + $0x30] sm:$0xff]   ;;  %v1124_v29 = vld [vmem:[#allocation5 + $0x38] sm:$0xff]   ;;  %v54_v34 = vld [vmem:[#allocation2] sm:$0xff] }
  0x30   :  { %961 = vmatpush3.bf16.msra.mxu0 %v1104_v9  ;;  %v1121_v26 = vld [vmem:[#allocation5 + $0xf0] sm:$0xff]   ;;  %v1125_v30 = vld [vmem:[#allocation5 + $0xf8] sm:$0xff]   ;;  %v61_v35 = vpack.c.bf16 %v54_v34, %v54_v34  ;;  %v1127_v36 = vld [vmem:[#allocation5 + $0x140] sm:$0xff]  }
  0x31   :  { %962 = vmatprep.subr.bf16.mxu0 %v1107_v12  ;;  %v1122_v27 = vld [vmem:[#allocation5 + $0xb0] sm:$0xff]   ;;  %v1126_v33 = vld [vmem:[#allocation5 + $0xb8] sm:$0xff]   ;;  %v57_v37 = vld [vmem:[#allocation2 + $0x18] sm:$0xff] }
  0x32   :  { %983 = vmatpush3.bf16.msra.mxu1 %v1106_v11  ;;  %v55_v31 = vld [vmem:[#allocation2 + $0x8] sm:$0xff]  ;;  %v64_v38 = vpack.c.bf16 %v57_v37, %v57_v37  ;;  %v1128_v39 = vld [vmem:[#allocation5 + $0x100] sm:$0xff]   ;;  %v56_v40 = vld [vmem:[#allocation2 + $0x10] sm:$0xff] }
  0x33   :  { %984 = vmatprep.subr.bf16.mxu1 %v1109_v14  ;;  %v62_v32 = vpack.c.bf16 %v55_v31, %v55_v31  ;;  %v63_v41 = vpack.c.bf16 %v56_v40, %v56_v40  ;;  %v1129_v42 = vld [vmem:[#allocation5 + $0x148] sm:$0xff]   ;;  %v1131_v45 = vld [vmem:[#allocation5 + $0x150] sm:$0xff]   ;;  %v1133_v47 = vld [vmem:[#allocation5 + $0x158] sm:$0xff]  }
  0x34   :  { %963 = vmatpush3.bf16.msra.mxu0 %v1108_v13  ;;  %543 = vmatprep.mubr.bf16.mxu1 %v64_v38  ;;  %v1130_v43 = vld [vmem:[#allocation5 + $0x108] sm:$0xff]   ;;  %v1132_v46 = vld [vmem:[#allocation5 + $0x110] sm:$0xff]   ;;  %v1134_v48 = vld [vmem:[#allocation5 + $0x118] sm:$0xff]  }
  0x35   :  { %964 = vmatprep.subr.bf16.mxu0 %v1111_v16  ;;  %503 = vmatprep.mubr.bf16.mxu0 %v62_v32  ;;  %v1135_v49 = vld [vmem:[#allocation5 + $0x160] sm:$0xff]   ;;  %v1137_v51 = vld [vmem:[#allocation5 + $0x168] sm:$0xff]   ;;  %v59_v54 = vld [vmem:[#allocation2 + $0x28] sm:$0xff] }
  0x36   :  { %985 = vmatpush3.bf16.msra.mxu1 %v1110_v15  ;;  %v1136_v50 = vld [vmem:[#allocation5 + $0x120] sm:$0xff]   ;;  %v1138_v52 = vld [vmem:[#allocation5 + $0x128] sm:$0xff]   ;;  %v1139_v55 = vld [vmem:[#allocation5 + $0x170] sm:$0xff]   ;;  %v66_v56 = vpack.c.bf16 %v59_v54, %v59_v54 }
  0x37   :  { %986 = vmatprep.subr.bf16.mxu1 %v1113_v18  ;;  %v1143_v53 = vld [vmem:[#allocation5 + $0x180] sm:$0xff]   ;;  %v60_v57 = vld [vmem:[#allocation2 + $0x30] sm:$0xff]  ;;  %v1140_v59 = vld [vmem:[#allocation5 + $0x130] sm:$0xff]  }
  0x38   :  { %965 = vmatpush3.bf16.msra.mxu0 %v1112_v17  ;;  %v67_v58 = vpack.c.bf16 %v60_v57, %v60_v57  ;;  %v1141_v60 = vld [vmem:[#allocation5 + $0x178] sm:$0xff]   ;;  %v58_v62 = vld [vmem:[#allocation2 + $0x20] sm:$0xff]  ;;  %v1145_v1 = vld [vmem:[%s1412_s3 + $0x8] sm:$0xff]  }
  0x39   :  { %966 = vmatprep.subr.bf16.mxu0 %v1115_v20  ;;  %v1142_v61 = vld [vmem:[#allocation5 + $0x138] sm:$0xff]   ;;  %v65_v63 = vpack.c.bf16 %v58_v62, %v58_v62  ;;  %v1144_v0 = vld [vmem:[%s1412_s3] sm:$0xff]   ;;  %v1147_v3 = vld [vmem:[%s1412_s3 + $0x18] sm:$0xff]  }
  0x3a   :  { %987 = vmatpush3.bf16.msra.mxu1 %v1114_v19  ;;  %v1146_v2 = vld [vmem:[%s1412_s3 + $0x10] sm:$0xff]   ;;  %v1148_v4 = vld [vmem:[%s1412_s3 + $0x20] sm:$0xff]   ;;  %v1149_v5 = vld [vmem:[%s1412_s3 + $0x28] sm:$0xff]  }
  0x3b   :  { %988 = vmatprep.subr.bf16.mxu1 %v1117_v22  ;;  %v1150_v6 = vld [vmem:[%s1412_s3 + $0x30] sm:$0xff]   ;;  %v1151_v7 = vld [vmem:[%s1412_s3 + $0x38] sm:$0xff]   ;;  %v1152_v8 = vld [vmem:[%s1414_s5] sm:$0xff]  }
  0x3c   :  { %967 = vmatpush3.bf16.msra.mxu0 %v1116_v21  ;;  %v1153_v9 = vld [vmem:[%s1414_s5 + $0x8] sm:$0xff]   ;;  %v1154_v10 = vld [vmem:[%s1414_s5 + $0x10] sm:$0xff]   ;;  %v1155_v11 = vld [vmem:[%s1414_s5 + $0x18] sm:$0xff]  }
  0x3d   :  { %968 = vmatprep.subr.bf16.mxu0 %v1119_v24  ;;  %v1156_v12 = vld [vmem:[%s1414_s5 + $0x20] sm:$0xff]   ;;  %v1157_v13 = vld [vmem:[%s1414_s5 + $0x28] sm:$0xff]   ;;  %v1158_v40 = vld [vmem:[%s1414_s5 + $0x30] sm:$0xff]  }
  0x3e   :  { %989 = vmatpush3.bf16.msra.mxu1 %v1118_v23  ;;  %v887_v15 = vld [vmem:[%s1411_s2] ss:$0 sm:$0xff] }
  0x3f   :  { %990 = vmatprep.subr.bf16.mxu1 %v1121_v26 }
  0x40   :  { %969 = vmatpush3.bf16.msra.mxu0 %v1120_v25 }
  0x41   :  { %970 = vmatprep.subr.bf16.mxu0 %v1123_v28 }
  0x42   :  { %991 = vmatpush3.bf16.msra.mxu1 %v1122_v27 }
  0x43   :  { %992 = vmatprep.subr.bf16.mxu1 %v1125_v30 }
  0x44   :  { %971 = vmatpush3.bf16.msra.mxu0 %v1124_v29 }
  0x45   :  { %1000 = vmatprep.subr.bf16.mxu0 %v1127_v36 }
  0x46   :  { %993 = vmatpush3.bf16.msra.mxu1 %v1126_v33 }
  0x47   :  { %504 = vmatmul.mubr.bf16.vlgmr.msra.gmra.mrb[0].mxu0 %v61_v35  ;;  %1042 = vmatprep.subr.bf16.mxu1 %v1240_v44 }
  0x48   :  { %1001 = vmatpush3.bf16.msra.mxu0 %v1128_v39  ;;  %583 = vmatprep.mubr.bf16.mxu0 %v66_v56 }
  0x49   :  { %544 = vmatmul.mubr.bf16.vlgmr.msra.gmra.mrb[0].mxu1 %v63_v41  ;;  %1002 = vmatprep.subr.bf16.mxu0 %v1129_v42  ;;  %v1159_v41 = vld [vmem:[%s1414_s5 + $0x38] sm:$0xff]   ;;  %v938_v42 = vld [vmem:[%s1413_s4] ss:$0 sm:$0xff]  ;;  %s1242_s4 = smov [#allocation7]  }
  0x4a   :  { %1044 = vmatprep.mubr.msk.bf16.mxu1 %vm1241_vm0, %v1240_v44  ;;  %1043 = vmatpush3.bf16.msra.mxu1 %v1143_v53  ;;  %s877_s5 = sshll.u32 %s1242_s4, 4  ;;  %s878_s5 = int_to_ptr.vmem [resolvable:$true] %s877_s5 }
  0x4b   :  { %1048 = vmatprep.subr.bf16.mxu1 %v1240_v44  ;;  %p1213_p3 = scmp.lt.s32.totalorder %s878_s5, %s878_s5 }
  0x4c   :  { %1003 = vmatpush3.bf16.msra.mxu0 %v1130_v43 }
  0x4d   :  { %1004 = vmatprep.subr.bf16.mxu0 %v1131_v45 }
  0x50   :  { %1005 = vmatpush3.bf16.msra.mxu0 %v1132_v46 }
  0x51   :  { %1006 = vmatprep.subr.bf16.mxu0 %v1133_v47  ;;  %1045 = vmatmul.mubr.msk.bf16.vlgmr.msra.gmra.mrb[4].mxu1 %vm467_vm1, %v67_v58 }
  0x52   :  { %1064 = vmatprep.mubr.msk.bf16.mxu1 %vm1241_vm0, %v1240_v44  ;;  %1049 = vmatpush3.bf16.msra.mxu1 %v1144_v0 }
  0x53   :  { %1050 = vmatprep.subr.bf16.mxu1 %v1240_v44 }
  0x54   :  { %1007 = vmatpush3.bf16.msra.mxu0 %v1134_v48 }
  0x55   :  { %1008 = vmatprep.subr.bf16.mxu0 %v1135_v49 }
  0x56   :  { %1051 = vmatpush3.bf16.msra.mxu1 %v1145_v1 }
  0x57   :  { %1052 = vmatprep.subr.bf16.mxu1 %v1240_v44 }
  0x58   :  { %1009 = vmatpush3.bf16.msra.mxu0 %v1136_v50 }
  0x59   :  { %1010 = vmatprep.subr.bf16.mxu0 %v1137_v51 }
  0x5a   :  { %1053 = vmatpush3.bf16.msra.mxu1 %v1146_v2 }
  0x5b   :  { %1054 = vmatprep.subr.bf16.mxu1 %v1240_v44 }
  0x5c   :  { %1011 = vmatpush3.bf16.msra.mxu0 %v1138_v52 }
  0x5d   :  { %1012 = vmatprep.subr.bf16.mxu0 %v1139_v55 }
  0x5e   :  { %1055 = vmatpush3.bf16.msra.mxu1 %v1147_v3 }
  0x5f   :  { %1056 = vmatprep.subr.bf16.mxu1 %v1240_v44 }
  0x60   :  { %1013 = vmatpush3.bf16.msra.mxu0 %v1140_v59 }
  0x61   :  { %1014 = vmatprep.subr.bf16.mxu0 %v1141_v60 }
  0x62   :  { %1057 = vmatpush3.bf16.msra.mxu1 %v1148_v4 }
  0x63   :  { %1058 = vmatprep.subr.bf16.mxu1 %v1240_v44 }
  0x64   :  { %1015 = vmatpush3.bf16.msra.mxu0 %v1142_v61 }
  0x65   :  { %1068 = vmatprep.subr.bf16.mxu0 %v1240_v44 }
  0x66   :  { %1059 = vmatpush3.bf16.msra.mxu1 %v1149_v5 }
  0x67   :  { %584 = vmatmul.mubr.bf16.vlgmr.msra.gmra.mrb[4].mxu0 %v65_v63  ;;  %1060 = vmatprep.subr.bf16.mxu1 %v1240_v44 }
  0x68   :  { %1084 = vmatprep.mubr.msk.bf16.mxu0 %vm1241_vm0, %v1240_v44  ;;  %1069 = vmatpush3.bf16.msra.mxu0 %v1152_v8 }
  0x69   :  { %1070 = vmatprep.subr.bf16.mxu0 %v1240_v44 }
  0x6a   :  { %1061 = vmatpush3.bf16.msra.mxu1 %v1150_v6 }
  0x6b   :  { %1062 = vmatprep.subr.bf16.mxu1 %v1240_v44 }
  0x6c   :  { %1071 = vmatpush3.bf16.msra.mxu0 %v1153_v9 }
  0x6d   :  { %1072 = vmatprep.subr.bf16.mxu0 %v1240_v44 }
  0x6e   :  { %1063 = vmatpush3.bf16.msra.mxu1 %v1151_v7 }
  0x70   :  { %1073 = vmatpush3.bf16.msra.mxu0 %v1154_v10 }
  0x71   :  { %1074 = vmatprep.subr.bf16.mxu0 %v1240_v44 }
  0x74   :  { %1075 = vmatpush3.bf16.msra.mxu0 %v1155_v11 }
  0x75   :  { %1076 = vmatprep.subr.bf16.mxu0 %v1240_v44 }
  0x78   :  { %1077 = vmatpush3.bf16.msra.mxu0 %v1156_v12 }
  0x79   :  { %1078 = vmatprep.subr.bf16.mxu0 %v1240_v44 }
  0x7c   :  { %1079 = vmatpush3.bf16.msra.mxu0 %v1157_v13 }
  0x7d   :  { %1080 = vmatprep.subr.bf16.mxu0 %v1240_v44 }
  0x80   :  { %1081 = vmatpush3.bf16.msra.mxu0 %v1158_v40 }
  0x81   :  { %1082 = vmatprep.subr.bf16.mxu0 %v1240_v44  ;;  %v947_v44 = vld [vmem:[%s1415_s6] ss:$0 sm:$0xff]  ;;  %s1208_s6 = scalar_lea.vmem %s878_s5, 128 }
  0x82   :  { %p1209_p2 = scmp.ne.s32.totalorder %s878_s5, %s1208_s6  ;;  %p1214_p4 = scmp.lt.s32.totalorder %s1208_s6, %s1208_s6 }
  0x84   :  { %1083 = vmatpush3.bf16.msra.mxu0 %v1159_v41  ;;  %p1215_p5 = por %p1214_p4, %p1213_p3 }
  0x86   :  { %p1216_p6 = pnand %p1215_p5, %p1209_p2 }
 0x11a   :  { %v972_v14 = vpop.f32.mrb[0].mxu0 }
 0x11b   :  { %v973_v16 = vpop.f32.mrb[1].mxu0 }
 0x11c   :  { %v974_v17 = vadd.f32 %v973_v16, %v972_v14  ;;  %v975_v18 = vpop.f32.mrb[2].mxu0  ;;  %v994_v19 = vpop.f32.mrb[0].mxu1 }
 0x11d   :  { %v976_v20 = vpop.f32.mrb[3].mxu0  ;;  %v995_v22 = vpop.f32.mrb[1].mxu1 }
 0x11e   :  { %v506_v21 = vadd.f32 %v974_v17, %v887_v15  ;;  %v996_v23 = vadd.f32 %v995_v22, %v994_v19  ;;  %v997_v24 = vpop.f32.mrb[2].mxu1 }
 0x11f   :  { %v998_v25 = vpop.f32.mrb[3].mxu1 }
 0x120   :  { %v546_v26 = vadd.f32 %v996_v23, %v506_v21 }
 0x124   :  { %v625_v27 = vpop.f32.mrb[4].mxu1 }
 0x125   :  { %v1046_v28 = vpop.f32.mrb[5].mxu1 }
 0x126   :  { %v628_v29 = vpop.f32.mrb[6].mxu1 }
 0x127   :  { %v1047_v30 = vpop.f32.mrb[7].mxu1 }
 0x13a   :  { %v1016_v31 = vpop.f32.mrb[4].mxu0 }
 0x13b   :  { %v1017_v32 = vpop.f32.mrb[5].mxu0 }
 0x13c   :  { %v1018_v33 = vadd.f32 %v1017_v32, %v1016_v31  ;;  %v1019_v34 = vpop.f32.mrb[6].mxu0 }
 0x13d   :  { %v1020_v35 = vpop.f32.mrb[7].mxu0 }
 0x13e   :  { %v586_v36 = vadd.f32 %v1018_v33, %v546_v26 }
 0x140   :  { %v626_v37 = vadd.f32 %v625_v27, %v586_v36 }
 0x142   :  { %v631_v38 = vmax.f32 %v626_v37, 0.0 }
 0x144   :  { %v632_v39 = vpack.c.bf16 %v631_v38, %v631_v38 }
 0x146   :  { %1065 = vmatmul.mubr.bf16.vlgmr.msra.gmra.mrb[8].mxu1 %v632_v39 }
 0x219   :  { %v738_v43 = vpop.f32.mrb[8].mxu1 }
 0x21a   :  { %v739_v45 = vadd.f32 %v938_v42, %v738_v43  ;;  %v1066_v46 = vpop.f32.mrb[9].mxu1 }
 0x21b   :  { %v741_v47 = vpop.f32.mrb[10].mxu1 }
 0x21c   :  { %v744_v48 = vmax.f32 %v739_v45, 0.0  ;;  %v1067_v49 = vpop.f32.mrb[11].mxu1 }
 0x21e   :  { %v745_v50 = vpack.c.bf16 %v744_v48, %v744_v48 }
 0x220   :  { %1085 = vmatmul.mubr.bf16.vlgmr.msra.gmra.mrb[8].mxu0 %v745_v50 }
 0x2f3   :  { %v851_v51 = vpop.f32.mrb[8].mxu0 }
 0x2f4   :  { %v852_v52 = vadd.f32 %v947_v44, %v851_v51  ;;  %v1086_v53 = vpop.f32.mrb[9].mxu0 }
 0x2f5   :  { %v854_v54 = vpop.f32.mrb[10].mxu0 }
 0x2f6   :  { %v1087_v55 = vpop.f32.mrb[11].mxu0  ;;  %v858_v56 = vsel %vm857_vm2, %v852_v52, -inf }
 0x2f7   :  { %859 = vmax.xlane.f32.xlu0 %v858_v56 }
 0x384   :  { %v860_v57 = vpop.xlane.xlu0 %859 }
 0x385   :  { %v861_v58 = vsub.f32 %v852_v52, %v860_v57 }
 0x387   :  { %v862_v59 = vmul.f32 1.442695, %v861_v58 }
 0x389   :  { %1160 = vpow2.f32 %v862_v59 }
 0x393   :  { %v1161_v60 = vpop.eup %1160 }
 0x394   :  { %v864_v61 = vsel %vm857_vm2, %v1161_v60, 0.0 }
 0x395   :  { %865 = vadd.xlane.f32.xlu0 %v864_v61 }
 0x422   :  { %v866_v62 = vpop.xlane.xlu0 %865 }
 0x423   :  { %1162 = vlog2.f32 %v866_v62 }
 0x42d   :  { %v1163_v63 = vpop.eup %1162 }
 0x42e   :  { %v868_v0 = vmul.f32 0.6931472, %v1163_v63 }
 0x430   :  { %v869_v1 = vsub.f32 %v861_v58, %v868_v0 }
 0x432   :  { %870 = vst.msk [vmem:[#allocation7] sm:$0xff] %vm857_vm2, %v869_v1 }
 0x433   :  { %1219 = shalt.err (!%p1216_p6)
}
 0x434   :  { %s1220_s15 = scalar_lea.hbm %s1416_s7, 128 }
 0x435   :  { %p1221_p7 = scmp.ne.s32.totalorder %s1416_s7, %s1220_s15  ;;  %p1224_p8 = scmp.lt.u32.totalorder %s1220_s15, %s1416_s7 }
 0x437   :  { %p1226_p9 = pnand %p1224_p8, %p1221_p7 }
 0x439   :  { %1229 = shalt.err (!%p1226_p9)
}
 0x43a   :  { %880 = dma.vmem_to_hbm [thread:$0]  %s878_s5, 128, %s1416_s7, [#allocation4]  }
 0x43b   :  { %1234 = dma.done.wait [#allocation4], 128  }
 0x43c   :  { %1235 = vsyncadd [#allocation4], 4294967168 }
 0x43d   :  { %884 = vsyncpa [#allocation3], 1 }
 0x43e   :  { %885 = vsyncpa [#allocation6], 1 }
 0x43f   :  { %886 = vsyncpa [#allocation4], 1 }

</bundles_post_ra>
